<compile_context>
chip_gen: v6e
topology: v6e:2x2x1
jax: 0.10.0
libtpu: 0.0.40
codegen_flags: <defaults>
</compile_context>

<pallas_src>
import functools
import math

import jax
import jax.numpy as jnp
from jax.experimental import pallas as pl
from jax.experimental.pallas import tpu as pltpu


def make_positional_encoding(embed_size: int, max_len: int = 5000) -> jnp.ndarray:
    """The `pe` buffer from the torch module's __init__, stored as (max_len, embed)."""
    position = jnp.arange(max_len, dtype=jnp.float32)[:, None]            # (max_len, 1)
    div_term = jnp.exp(
        jnp.arange(0, embed_size, 2, dtype=jnp.float32)
        * (-math.log(10000.0) / embed_size))                              # (embed/2,)
    pe = jnp.zeros((max_len, embed_size), dtype=jnp.float32)
    pe = pe.at[:, 0::2].set(jnp.sin(position * div_term))
    pe = pe.at[:, 1::2].set(jnp.cos(position * div_term))
    return pe


# --------------------------------------------------------------------------- #
# Kernels
# --------------------------------------------------------------------------- #
def _add_pe_kernel_3d(x_ref, pe_ref, o_ref):
    # x_ref/o_ref: (tile_s, B, E); pe_ref: (tile_s, E) broadcast over batch.
    x = x_ref[...].astype(jnp.float32)
    o_ref[...] = (x + pe_ref[...][:, None, :]).astype(o_ref.dtype)


def _add_pe_kernel_flat(x_ref, pe_ref, o_ref, *, batch):
    # x_ref/o_ref: (tile_s, B*E) lane-dense slab; pe_ref: (tile_s, E).
    x = x_ref[...].astype(jnp.float32)
    pe = pe_ref[...]
    if batch > 1:
        # Widen pe across the batch axis in-register.  Pieces are 128-lane
        # aligned because this path is only taken when E % 128 == 0.
        pe = jnp.concatenate([pe] * batch, axis=-1)
    o_ref[...] = (x + pe).astype(o_ref.dtype)


# --------------------------------------------------------------------------- #
# Tile / VMEM sizing
# --------------------------------------------------------------------------- #
def _vmem_limit_bytes() -> int:
    """Scoped-VMEM limit for this kernel: ~3/4 of this chip's physical VMEM."""
    try:
        cap = int(pltpu.get_tpu_info().vmem_capacity_bytes)
    except Exception:
        cap = 64 * 1024 * 1024  # conservative default (v7x physical VMEM per TC)
    if cap < (16 << 20):
        cap = 64 << 20
    return (cap * 3) // 4


def _choose_tile_s(seq: int, x_row_bytes: int, pe_row_bytes: int,
                   vmem_limit: int) -> int:
    """Largest sequence tile whose double-buffered x/out/pe blocks fit VMEM."""
    if seq <= 8:
        return seq
    budget = (vmem_limit * 2) // 3                    # headroom for temporaries
    per_row = 2 * (2 * x_row_bytes + pe_row_bytes)    # 2x = double buffering
    rows = budget // max(1, per_row)
    # ~8 MiB x-blocks are plenty to amortize the ~0.35us per-grid-step cost.
    rows = min(rows, (8 * 1024 * 1024) // max(1, x_row_bytes))
    # Keep >= 2 grid steps so both TensorCores of a v7x chip get work.
    if seq >= 16:
        rows = min(rows, seq // 2)
    rows = max(8, (rows // 8) * 8)
    return seq if rows >= seq else rows


# --------------------------------------------------------------------------- #
# Forward
# --------------------------------------------------------------------------- #
def positional_encoding_forward(x: jnp.ndarray, pe: jnp.ndarray) -> jnp.ndarray:
    """x: (seq, batch, embed); pe: (max_len, embed) fp32 table.

    Matches `x + pe[:, :x.size(1), :]` of the torch module (pe broadcasts over
    batch; torch broadcasting between seq and max_len on dim 0).
    """
    S, B, E = x.shape
    L, E_pe = pe.shape
    if E != E_pe:
        raise ValueError(f"embed mismatch: x has {E}, pe has {E_pe}")
    if not (S == L or S == 1 or L == 1):
        raise ValueError(
            f"torch broadcasting requires seq ({S}) == max_len ({L}) or one of them == 1")

    # Resolve torch dim-0 broadcasting up front so the kernel only ever sees
    # equal-length x / pe (materializes only in the rare seq==1 / max_len==1 case).
    S_out = max(S, L)
    if S != S_out:
        x = jnp.broadcast_to(x, (S_out, B, E))
    if L != S_out:
        pe = jnp.broadcast_to(pe, (S_out, E))
    pe = pe.astype(jnp.float32)

    itemsize = jnp.dtype(x.dtype).itemsize
    vmem_limit = _vmem_limit_bytes()
    tile_s = _choose_tile_s(S_out, B * E * itemsize, E * 4, vmem_limit)
    grid = (pl.cdiv(S_out, tile_s),)
    compiler_params = pltpu.CompilerParams(
        dimension_semantics=("parallel",),
        vmem_limit_bytes=vmem_limit,
    )

    # Lane-dense fast path: view x/out as (S, B*E) (a free, row-major reshape).
    # Safe when no in-kernel widening of pe is needed (B == 1) or when the
    # widening is 128-lane aligned (E % 128 == 0) and B is small enough that
    # the natural layout would waste sublanes.
    use_flat = (B == 1) or (B < 8 and E % 128 == 0)

    if use_flat:
        x_in = x.reshape(S_out, B * E)
        out = pl.pallas_call(
            functools.partial(_add_pe_kernel_flat, batch=B),
            out_shape=jax.ShapeDtypeStruct((S_out, B * E), x.dtype),
            grid_spec=pltpu.PrefetchScalarGridSpec(
                num_scalar_prefetch=0,
                grid=grid,
                in_specs=[
                    pl.BlockSpec((tile_s, B * E), lambda i: (i, 0)),
                    pl.BlockSpec((tile_s, E), lambda i: (i, 0)),
                ],
                out_specs=pl.BlockSpec((tile_s, B * E), lambda i: (i, 0)),
            ),
            compiler_params=compiler_params,
            input_output_aliases={0: 0},   # out = x + pe in place when x is donated
        )(x_in, pe)
        return out.reshape(S_out, B, E)

    return pl.pallas_call(
        _add_pe_kernel_3d,
        out_shape=jax.ShapeDtypeStruct((S_out, B, E), x.dtype),
        grid_spec=pltpu.PrefetchScalarGridSpec(
            num_scalar_prefetch=0,
            grid=grid,
            in_specs=[
                pl.BlockSpec((tile_s, B, E), lambda i: (i, 0, 0)),
                pl.BlockSpec((tile_s, E), lambda i: (i, 0)),
            ],
            out_specs=pl.BlockSpec((tile_s, B, E), lambda i: (i, 0, 0)),
        ),
        compiler_params=compiler_params,
        input_output_aliases={0: 0},
    )(x, pe)


# --------------------------------------------------------------------------- #
# Demo / self-check
# --------------------------------------------------------------------------- #
if __name__ == "__main__":
    key = jax.random.PRNGKey(0)
    k1, k2, k3, k4 = jax.random.split(key, 4)
    checks = []

    # 1) original toy config: (seq=8, batch=2, embed=32) fp32 -> 3-D blocked path
    E, L = 32, 8
    x = jax.random.normal(k1, (L, 2, E), dtype=jnp.float32)
    pe = make_positional_encoding(E, L)
    ref = x + pe[:, None, :]
    out = jax.block_until_ready(positional_encoding_forward(x, pe))
    checks.append(out.shape == ref.shape and jnp.allclose(out, ref, atol=1e-6, rtol=1e-6))

    # 2) lane-dense flattened path + ragged last tile: (seq=20, batch=2, embed=128)
    E, L = 128, 20
    x = jax.random.normal(k2, (L, 2, E), dtype=jnp.float32)
    pe = make_positional_encoding(E, L)
    ref = x + pe[:, None, :]
    out = jax.block_until_ready(positional_encoding_forward(x, pe))
    checks.append(out.shape == ref.shape and jnp.allclose(out, ref, atol=1e-6, rtol=1e-6))

    # 3) torch dim-0 broadcast edge case: x has seq==1, pe has max_len=4
    E, L = 32, 4
    x = jax.random.normal(k3, (1, 2, E), dtype=jnp.float32)
    pe = make_positional_encoding(E, L)
    ref = x + pe[:, None, :]                      # -> (4, 2, 32)
    out = jax.block_until_ready(positional_encoding_forward(x, pe))
    checks.append(out.shape == ref.shape and jnp.allclose(out, ref, atol=1e-6, rtol=1e-6))

    # 4) bf16 activations (kernel upcasts, adds f32 pe, casts back)
    E, L = 32, 8
    x = jax.random.normal(k4, (L, 2, E), dtype=jnp.bfloat16)
    pe = make_positional_encoding(E, L)
    ref = (x.astype(jnp.float32) + pe[:, None, :]).astype(jnp.bfloat16)
    out = jax.block_until_ready(positional_encoding_forward(x, pe))
    checks.append(out.dtype == jnp.bfloat16 and jnp.allclose(
        out.astype(jnp.float32), ref.astype(jnp.float32), atol=1e-2))

    assert all(bool(c) for c in checks)
    print("KERNEL_OK")
</pallas_src>

<mosaic_0001>
module attributes {stable_mosaic.version = 11 : i64} {
  func.func @_add_pe_kernel_3d(%arg0: i32, %arg1: memref<8x2x32xf32, #tpu.memory_space<vmem>>, %arg2: memref<8x32xf32, #tpu.memory_space<vmem>>, %arg3: memref<8x2x32xf32, #tpu.memory_space<vmem>>) attributes {dimension_semantics = [#tpu.dimension_semantics<parallel>], iteration_bounds = array<i64: 1>, scalar_prefetch = 0 : i64, scratch_operands = 0 : i64, tpu.core_type = #tpu.core_type<tc>, window_params = [{transform_indices = @transform_0, window_bounds = array<i64: 8, 2, 32>}, {transform_indices = @transform_1, window_bounds = array<i64: 8, 32>}, {transform_indices = @transform_2, window_bounds = array<i64: 8, 2, 32>}]} {
    %c0 = arith.constant 0 : index
    %c0_0 = arith.constant 0 : index
    %c0_1 = arith.constant 0 : index
    %0 = vector.load %arg1[%c0, %c0_0, %c0_1] : memref<8x2x32xf32, #tpu.memory_space<vmem>>, vector<8x2x32xf32>
    %c0_2 = arith.constant 0 : index
    %c0_3 = arith.constant 0 : index
    %1 = vector.load %arg2[%c0_2, %c0_3] : memref<8x32xf32, #tpu.memory_space<vmem>>, vector<8x32xf32>
    %2 = vector.shape_cast %1 : vector<8x32xf32> to vector<8x1x32xf32>
    %3 = vector.broadcast %2 : vector<8x1x32xf32> to vector<8x2x32xf32>
    %4 = arith.addf %0, %3 : vector<8x2x32xf32>
    %c0_4 = arith.constant 0 : index
    %c0_5 = arith.constant 0 : index
    %c0_6 = arith.constant 0 : index
    %5 = vector.load %arg3[%c0_4, %c0_5, %c0_6] : memref<8x2x32xf32, #tpu.memory_space<vmem>>, vector<8x2x32xf32>
    tpu.vector_store %arg3[%c0_4, %c0_5, %c0_6], %4 {strides = array<i32>} : memref<8x2x32xf32, #tpu.memory_space<vmem>>, vector<8x2x32xf32>,
    return
  }
  func.func @transform_0(%arg0: i32) -> (i32, i32, i32) {
    %c0_i32 = arith.constant 0 : i32
    %c0_i32_0 = arith.constant 0 : i32
    %c0_i32_1 = arith.constant 0 : i32
    return %arg0, %c0_i32, %c0_i32_0 : i32, i32, i32
  }
  func.func @transform_1(%arg0: i32) -> (i32, i32) {
    %c0_i32 = arith.constant 0 : i32
    %c0_i32_0 = arith.constant 0 : i32
    return %arg0, %c0_i32 : i32, i32
  }
  func.func @transform_2(%arg0: i32) -> (i32, i32, i32) {
    %c0_i32 = arith.constant 0 : i32
    %c0_i32_0 = arith.constant 0 : i32
    %c0_i32_1 = arith.constant 0 : i32
    return %arg0, %c0_i32, %c0_i32_0 : i32, i32, i32
  }
}

</mosaic_0001>

<bundles_post_ra>
// kernel: tpu_custom_call.1
= control target key start
LH: loop header
LB: loop body
LE: loop exit
PB: predicated region body
PF: predicated region fallthrough
CT: control target
= control target key end

     0   :  { %7 = vsyncpa [#allocation3], 0  ;;  %s251_s0 = inlined_call_operand.hbm [shape: f32[8,2,32], index: 0, kind: input, shape index: {}, may-alias: {0,2}]   ;;  %s252_s1 = inlined_call_operand.vmem [shape: f32[8,32], index: 1, kind: input, shape index: {}]   ;;  %s253_s2 = inlined_call_operand.hbm [shape: f32[8,2,32], index: 2, kind: output, shape index: {}, may-alias: {0,2}]  }
   0x1   :  { %8 = vsyncpa [#allocation4], 0  ;;  %s208_s9 = smov [#allocation2]  }
   0x2   :  { %s14_s10 = sshll.u32 %s208_s9, 4  ;;  %s15_s10 = int_to_ptr.vmem [resolvable:$true] %s14_s10 }
   0x3   :  { %s172_s11 = scalar_lea.vmem %s15_s10, 256  ;;  %p177_p1 = scmp.lt.s32.totalorder %s15_s10, %s15_s10 }
   0x4   :  { %p173_p0 = scmp.ne.s32.totalorder %s15_s10, %s172_s11  ;;  %p178_p2 = scmp.lt.s32.totalorder %s172_s11, %s172_s11 }
   0x6   :  { %p179_p3 = por %p178_p2, %p177_p1 }
   0x8   :  { %p180_p4 = pnand %p179_p3, %p173_p0 }
   0xa   :  { %183 = shalt.err (!%p180_p4)
}
   0xb   :  { %s209_s12 = smov 32   ;;  %s210_s13 = smov 2  }
   0xc   :  { %20 = dma.hbm_to_vmem [thread:$0]  %s251_s0, 256, %s15_s10, [#allocation3], %s209_s12, %s209_s12, %s210_s13  }
   0xd   :  { %204 = dma.done.wait [#allocation3], 256  }
   0xe   :  { %205 = vsyncadd [#allocation3], 4294967040  ;;  %v40_v0 = vlaneseq  ;;  %v211_v1 = vmov 1966171168   ;;  %v34_v6 = vld [vmem:[%s252_s1] sm:$0xff]  ;;  %vm133_vm0 = vcmask 254976  }
   0xf   :  { %v38_v2 = vunpack.c.l.s4 %v211_v1  ;;  %v36_v9 = vcombine.high %v34_v6, %v34_v6  ;;  %v26_v13 = vld [vmem:[#allocation2] sm:$0x3]  ;;  %v27_v18 = vld [vmem:[#allocation2 + $0x2] sm:$0x3]  ;;  %v28_v19 = vld [vmem:[#allocation2 + $0x4] sm:$0x3] }
  0x10   :  { %v41_v3 = vshrl.u32 %v40_v0, 7  ;;  %v30_v25 = vld [vmem:[#allocation2 + $0x8] sm:$0x3]  ;;  %v29_v26 = vld [vmem:[#allocation2 + $0x6] sm:$0x3]  ;;  %s212_s0 = smov [#allocation5]  }
  0x11   :  { %v39_v4 = vunpack.c.0.s8 %v38_v2  ;;  %v31_v33 = vld [vmem:[#allocation2 + $0xa] sm:$0x3]  ;;  %v32_v34 = vld [vmem:[#allocation2 + $0xc] sm:$0x3]  ;;  %v33_v40 = vld [vmem:[#allocation2 + $0xe] sm:$0x3] }
  0x12   :  { %v87_v8 = vsub.s32 0, %v41_v3  ;;  %s147_s1 = sshll.u32 %s212_s0, 4  ;;  %s148_s1 = int_to_ptr.vmem [resolvable:$true] %s147_s1 }
  0x13   :  { %v42_v5 = vsub.s32 %v39_v4, %v41_v3  ;;  %s184_s18 = scalar_lea.vmem %s148_s1, 256  ;;  %p189_p6 = scmp.lt.s32.totalorder %s148_s1, %s148_s1 }
  0x14   :  { %p185_p5 = scmp.ne.s32.totalorder %s148_s1, %s184_s18  ;;  %p190_p7 = scmp.lt.s32.totalorder %s184_s18, %s184_s18 }
  0x15   :  { %v43_v7 = vrot.slane %v34_v6, %v42_v5  ;;  %v50_v12 = vrot.slane %v36_v9, %v42_v5 }
  0x16   :  { %p191_p8 = por %p190_p7, %p189_p6 }
  0x17   :  { %v59_v10 = vrot.slane %v43_v7, %v42_v5  ;;  %v51_v11 = vcombine.high %v43_v7, %v43_v7  ;;  %v66_v17 = vrot.slane %v50_v12, %v42_v5  ;;  %v52_v20 = vcombine.high %v50_v12, %v50_v12 }
  0x18   :  { %p192_p9 = pnand %p191_p8, %p185_p5 }
  0x19   :  { %v88_v14 = vrot.slane %v59_v10, %v87_v8  ;;  %v73_v15 = vrot.slane %v51_v11, %v42_v5  ;;  %v81_v16 = vcombine.high %v59_v10, %v59_v10  ;;  %v104_v27 = vrot.slane %v66_v17, %v87_v8 }
  0x1a   :  { %v80_v28 = vrot.slane %v52_v20, %v42_v5  ;;  %v82_v29 = vcombine.high %v66_v17, %v66_v17 }
  0x1b   :  { %v125_v21 = vadd.f32 %v88_v14, %v26_v13  ;;  %v92_v22 = vrot.slane %v73_v15, %v87_v8  ;;  %v96_v23 = vrot.slane %v81_v16, %v87_v8  ;;  %v83_v24 = vcombine.high %v73_v15, %v73_v15 }
  0x1c   :  { %v129_v35 = vadd.f32 %v104_v27, %v30_v25  ;;  %v108_v36 = vrot.slane %v80_v28, %v87_v8  ;;  %v112_v37 = vrot.slane %v82_v29, %v87_v8  ;;  %v84_v38 = vcombine.high %v80_v28, %v80_v28 }
  0x1d   :  { %134 = vst.msk [vmem:[#allocation5] sm:$0x3] %vm133_vm0, %v125_v21  ;;  %v126_v30 = vadd.f32 %v92_v22, %v27_v18  ;;  %v127_v31 = vadd.f32 %v96_v23, %v28_v19  ;;  %v100_v32 = vrot.slane %v83_v24, %v87_v8 }
  0x1e   :  { %138 = vst.msk [vmem:[#allocation5 + $0x8] sm:$0x3] %vm133_vm0, %v129_v35  ;;  %v130_v41 = vadd.f32 %v108_v36, %v31_v33  ;;  %v131_v42 = vadd.f32 %v112_v37, %v32_v34  ;;  %v116_v43 = vrot.slane %v84_v38, %v87_v8 }
  0x1f   :  { %135 = vst.msk [vmem:[#allocation5 + $0x2] sm:$0x3] %vm133_vm0, %v126_v30  ;;  %136 = vst.msk [vmem:[#allocation5 + $0x4] sm:$0x3] %vm133_vm0, %v127_v31  ;;  %v128_v39 = vadd.f32 %v100_v32, %v29_v26 }
  0x20   :  { %139 = vst.msk [vmem:[#allocation5 + $0xa] sm:$0x3] %vm133_vm0, %v130_v41  ;;  %140 = vst.msk [vmem:[#allocation5 + $0xc] sm:$0x3] %vm133_vm0, %v131_v42  ;;  %v132_v44 = vadd.f32 %v116_v43, %v33_v40 }
  0x21   :  { %137 = vst.msk [vmem:[#allocation5 + $0x6] sm:$0x3] %vm133_vm0, %v128_v39 }
  0x22   :  { %141 = vst.msk [vmem:[#allocation5 + $0xe] sm:$0x3] %vm133_vm0, %v132_v44 }
  0x23   :  { %195 = shalt.err (!%p192_p9)
}
  0x24   :  { %153 = dma.vmem_to_hbm [thread:$0]  %s148_s1, 256, %s253_s2, [#allocation4], %s209_s12, %s209_s12, %s210_s13  }
  0x25   :  { %206 = dma.done.wait [#allocation4], 256  }
  0x26   :  { %207 = vsyncadd [#allocation4], 4294967040 }
  0x27   :  { %157 = vsyncpa [#allocation3], 1 }
  0x28   :  { %158 = vsyncpa [#allocation4], 1 }

</bundles_post_ra>
